<compile_context>
chip_gen: v7x
topology: tpu7x:2x2x1
jax: 0.10.0
libtpu: 0.0.40
codegen_flags: <defaults>
</compile_context>

<pallas_src>
import functools

import jax
import jax.numpy as jnp
from jax.experimental import pallas as pl
from jax.experimental.pallas import tpu as pltpu

HIDDEN = 128
HEAD_W = 128  # lane-dense fused head width (actor logits + critic value + pad)


def _round_up(x, m):
    return ((x + m - 1) // m) * m


def actor_critic_kernel(x_ref, w1_ref, b1_ref, w2_ref, b2_ref,
                        wh_ref, bh_ref, out_ref, *, action_size):
    # fc1 + relu  (bf16 operands, f32 accumulate, f32 bias)
    x = x_ref[...].astype(jnp.bfloat16)
    h1 = jnp.dot(x, w1_ref[...], preferred_element_type=jnp.float32) + b1_ref[...]
    h1 = jnp.maximum(h1, 0.0).astype(jnp.bfloat16)

    # fc2 + relu
    h2 = jnp.dot(h1, w2_ref[...], preferred_element_type=jnp.float32) + b2_ref[...]
    h2 = jnp.maximum(h2, 0.0).astype(jnp.bfloat16)

    # fused actor+critic head: one lane-dense [TILE_B, 128] matmul
    head = jnp.dot(h2, wh_ref[...], preferred_element_type=jnp.float32) + bh_ref[...]

    # softmax restricted to the first `action_size` lanes (pad masked to -inf)
    lane = jax.lax.broadcasted_iota(jnp.int32, head.shape, dimension=1)
    actor_mask = lane < action_size
    logits = jnp.where(actor_mask, head, -jnp.inf)
    m = jnp.max(logits, axis=-1, keepdims=True)
    e = jnp.exp(logits - m)                       # padded / critic lanes -> 0
    denom = jnp.sum(e, axis=-1, keepdims=True)
    # Exact f32 division (approx reciprocal broke the sum(probs)==1 invariant).
    probs = e / denom

    # lane-dense output: probs in [:A], raw head (critic value at lane A) elsewhere
    out_ref[...] = jnp.where(actor_mask, probs, head).astype(out_ref.dtype)


def actor_critic_forward(x, params, *, tile_b=256):
    """x: [B, S] float32. params: output of prepare_params(). Returns (probs, values)."""
    B, S = x.shape
    A = int(params["action_size"])

    # Pick a batch tile: multiple of 8 sublanes, capped at tile_b, and pad B to it.
    tile = min(tile_b, _round_up(B, 8))
    Bp = _round_up(B, tile)
    if Bp != B:
        x = jnp.pad(x, ((0, Bp - B), (0, 0)))

    grid = (Bp // tile,)

    in_specs = [
        pl.BlockSpec((tile, S), lambda i: (i, 0)),           # x (pipelined over B)
        pl.BlockSpec((S, HIDDEN), lambda i: (0, 0)),          # w1 (VMEM-resident)
        pl.BlockSpec((1, HIDDEN), lambda i: (0, 0)),          # b1
        pl.BlockSpec((HIDDEN, HIDDEN), lambda i: (0, 0)),     # w2
        pl.BlockSpec((1, HIDDEN), lambda i: (0, 0)),          # b2
        pl.BlockSpec((HIDDEN, HEAD_W), lambda i: (0, 0)),     # fused head weight
        pl.BlockSpec((1, HEAD_W), lambda i: (0, 0)),          # fused head bias
    ]
    out_specs = pl.BlockSpec((tile, HEAD_W), lambda i: (i, 0))

    out = pl.pallas_call(
        functools.partial(actor_critic_kernel, action_size=A),
        out_shape=jax.ShapeDtypeStruct((Bp, HEAD_W), jnp.float32),
        grid=grid,
        in_specs=in_specs,
        out_specs=out_specs,
        compiler_params=pltpu.CompilerParams(
            dimension_semantics=("parallel",)),
    )(
        x,
        params["w1"], params["b1"],
        params["w2"], params["b2"],
        params["wh"], params["bh"],
    )

    out = out[:B]
    probs = out[:, :A]
    values = out[:, A:A + 1]
    return probs, values


def init_raw_params(key, state_size, action_size, hidden=HIDDEN):
    """PyTorch-nn.Linear-style init, stored as [in, out] f32 (bias as [1, out])."""
    ks = jax.random.split(key, 8)

    def lin(kw, kb, fan_in, fan_out):
        bound = 1.0 / jnp.sqrt(fan_in)
        w = jax.random.uniform(kw, (fan_in, fan_out), jnp.float32, -bound, bound)
        b = jax.random.uniform(kb, (1, fan_out), jnp.float32, -bound, bound)
        return w, b

    w1, b1 = lin(ks[0], ks[1], state_size, hidden)
    w2, b2 = lin(ks[2], ks[3], hidden, hidden)
    wa, ba = lin(ks[4], ks[5], hidden, action_size)
    wc, bc = lin(ks[6], ks[7], hidden, 1)
    return dict(w1=w1, b1=b1, w2=w2, b2=b2, wa=wa, ba=ba, wc=wc, bc=bc)


def prepare_params(raw, action_size):
    """Kernel-ready params: bf16 matmul weights, f32 biases, fused+padded head."""
    hidden = raw["w1"].shape[1]
    pad = HEAD_W - (action_size + 1)
    wh = jnp.concatenate(
        [raw["wa"], raw["wc"], jnp.zeros((hidden, pad), jnp.float32)], axis=1)
    bh = jnp.concatenate(
        [raw["ba"], raw["bc"], jnp.zeros((1, pad), jnp.float32)], axis=1)
    return dict(
        w1=raw["w1"].astype(jnp.bfloat16),
        b1=raw["b1"],
        w2=raw["w2"].astype(jnp.bfloat16),
        b2=raw["b2"],
        wh=wh.astype(jnp.bfloat16),
        bh=bh,
        action_size=action_size,
    )


def reference_forward(x, raw):
    """Pure-JAX reference matching the kernel numerics (bf16 operands, f32 acc)."""
    def bdot(a, b):
        return jnp.dot(a.astype(jnp.bfloat16), b.astype(jnp.bfloat16),
                       preferred_element_type=jnp.float32)
    h1 = jnp.maximum(bdot(x, raw["w1"]) + raw["b1"], 0.0)
    h2 = jnp.maximum(bdot(h1, raw["w2"]) + raw["b2"], 0.0)
    logits = bdot(h2, raw["wa"]) + raw["ba"]
    probs = jax.nn.softmax(logits, axis=-1)
    values = bdot(h2, raw["wc"]) + raw["bc"]
    return probs, values


if __name__ == "__main__":
    key = jax.random.PRNGKey(0)
    k_x, k_p = jax.random.split(key)

    batch = 8
    state_size = 16
    action_size = 4

    x = jax.random.normal(k_x, (batch, state_size), dtype=jnp.float32)
    raw = init_raw_params(k_p, state_size, action_size)
    params = prepare_params(raw, action_size)

    probs, values = actor_critic_forward(x, params)
    jax.block_until_ready((probs, values))

    ref_probs, ref_values = reference_forward(x, raw)
    assert probs.shape == (batch, action_size)
    assert values.shape == (batch, 1)
    assert jnp.allclose(probs, ref_probs, atol=2e-3, rtol=2e-3)
    assert jnp.allclose(values, ref_values, atol=2e-3, rtol=2e-3)
    assert jnp.allclose(jnp.sum(probs, axis=-1), 1.0, atol=2e-3)

    print("KERNEL_OK")
</pallas_src>

<mosaic_0001>
module attributes {stable_mosaic.version = 11 : i64} {
  func.func @actor_critic_kernel(%arg0: i32, %arg1: memref<8x16xf32, #tpu.memory_space<vmem>>, %arg2: memref<16x128xbf16, #tpu.memory_space<vmem>>, %arg3: memref<1x128xf32, #tpu.memory_space<vmem>>, %arg4: memref<128x128xbf16, #tpu.memory_space<vmem>>, %arg5: memref<1x128xf32, #tpu.memory_space<vmem>>, %arg6: memref<128x128xbf16, #tpu.memory_space<vmem>>, %arg7: memref<1x128xf32, #tpu.memory_space<vmem>>, %arg8: memref<8x128xf32, #tpu.memory_space<vmem>>) attributes {dimension_semantics = [#tpu.dimension_semantics<parallel>], iteration_bounds = array<i64: 1>, scalar_prefetch = 0 : i64, scratch_operands = 0 : i64, tpu.core_type = #tpu.core_type<tc>, window_params = [{transform_indices = @transform_0, window_bounds = array<i64: 8, 16>}, {pipeline_mode = #tpu.pipeline_mode<synchronous>, transform_indices = @transform_1, window_bounds = array<i64: 16, 128>}, {pipeline_mode = #tpu.pipeline_mode<synchronous>, transform_indices = @transform_2, window_bounds = array<i64: 1, 128>}, {pipeline_mode = #tpu.pipeline_mode<synchronous>, transform_indices = @transform_3, window_bounds = array<i64: 128, 128>}, {pipeline_mode = #tpu.pipeline_mode<synchronous>, transform_indices = @transform_4, window_bounds = array<i64: 1, 128>}, {pipeline_mode = #tpu.pipeline_mode<synchronous>, transform_indices = @transform_5, window_bounds = array<i64: 128, 128>}, {pipeline_mode = #tpu.pipeline_mode<synchronous>, transform_indices = @transform_6, window_bounds = array<i64: 1, 128>}, {transform_indices = @transform_7, window_bounds = array<i64: 8, 128>}]} {
    %c0 = arith.constant 0 : index
    %c0_0 = arith.constant 0 : index
    %0 = vector.load %arg1[%c0, %c0_0] : memref<8x16xf32, #tpu.memory_space<vmem>>, vector<8x16xf32>
    %1 = arith.truncf %0 : vector<8x16xf32> to vector<8x16xbf16>
    %c0_1 = arith.constant 0 : index
    %c0_2 = arith.constant 0 : index
    %2 = vector.load %arg2[%c0_1, %c0_2] : memref<16x128xbf16, #tpu.memory_space<vmem>>, vector<16x128xbf16>
    %cst = arith.constant dense<0.000000e+00> : vector<8x128xf32>
    %3 = tpu.matmul %1, %2, %cst {dimension_numbers = #tpu.dot_dimension_numbers<[1], [0], [0], [1], [0, 0, 1, 1], [], []>} : vector<8x16xbf16>, vector<16x128xbf16>, vector<8x128xf32> -> vector<8x128xf32>
    %c0_3 = arith.constant 0 : index
    %c0_4 = arith.constant 0 : index
    %4 = vector.load %arg3[%c0_3, %c0_4] : memref<1x128xf32, #tpu.memory_space<vmem>>, vector<1x128xf32>
    %5 = vector.broadcast %4 : vector<1x128xf32> to vector<8x128xf32>
    %6 = arith.addf %3, %5 : vector<8x128xf32>
    %cst_5 = arith.constant 0.000000e+00 : f32
    %7 = vector.broadcast %cst_5 : f32 to vector<8x128xf32>
    %8 = arith.maximumf %6, %7 : vector<8x128xf32>
    %9 = arith.truncf %8 : vector<8x128xf32> to vector<8x128xbf16>
    %c0_6 = arith.constant 0 : index
    %c0_7 = arith.constant 0 : index
    %10 = vector.load %arg4[%c0_6, %c0_7] : memref<128x128xbf16, #tpu.memory_space<vmem>>, vector<128x128xbf16>
    %cst_8 = arith.constant dense<0.000000e+00> : vector<8x128xf32>
    %11 = tpu.matmul %9, %10, %cst_8 {dimension_numbers = #tpu.dot_dimension_numbers<[1], [0], [0], [1], [0, 0, 1, 1], [], []>} : vector<8x128xbf16>, vector<128x128xbf16>, vector<8x128xf32> -> vector<8x128xf32>
    %c0_9 = arith.constant 0 : index
    %c0_10 = arith.constant 0 : index
    %12 = vector.load %arg5[%c0_9, %c0_10] : memref<1x128xf32, #tpu.memory_space<vmem>>, vector<1x128xf32>
    %13 = vector.broadcast %12 : vector<1x128xf32> to vector<8x128xf32>
    %14 = arith.addf %11, %13 : vector<8x128xf32>
    %cst_11 = arith.constant 0.000000e+00 : f32
    %15 = vector.broadcast %cst_11 : f32 to vector<8x128xf32>
    %16 = arith.maximumf %14, %15 : vector<8x128xf32>
    %17 = arith.truncf %16 : vector<8x128xf32> to vector<8x128xbf16>
    %c0_12 = arith.constant 0 : index
    %c0_13 = arith.constant 0 : index
    %18 = vector.load %arg6[%c0_12, %c0_13] : memref<128x128xbf16, #tpu.memory_space<vmem>>, vector<128x128xbf16>
    %cst_14 = arith.constant dense<0.000000e+00> : vector<8x128xf32>
    %19 = tpu.matmul %17, %18, %cst_14 {dimension_numbers = #tpu.dot_dimension_numbers<[1], [0], [0], [1], [0, 0, 1, 1], [], []>} : vector<8x128xbf16>, vector<128x128xbf16>, vector<8x128xf32> -> vector<8x128xf32>
    %c0_15 = arith.constant 0 : index
    %c0_16 = arith.constant 0 : index
    %20 = vector.load %arg7[%c0_15, %c0_16] : memref<1x128xf32, #tpu.memory_space<vmem>>, vector<1x128xf32>
    %21 = vector.broadcast %20 : vector<1x128xf32> to vector<8x128xf32>
    %22 = arith.addf %19, %21 : vector<8x128xf32>
    %23 = tpu.iota {dimensions = array<i32: 1>} : vector<8x128xi32>
    %c4_i32 = arith.constant 4 : i32
    %24 = vector.broadcast %c4_i32 : i32 to vector<8x128xi32>
    %25 = arith.cmpi slt, %23, %24 : vector<8x128xi32>
    %cst_17 = arith.constant 0xFF800000 : f32
    %26 = vector.broadcast %cst_17 : f32 to vector<8x128xf32>
    %27 = arith.select %25, %22, %26 : vector<8x128xi1>, vector<8x128xf32>
    %cst_18 = arith.constant dense<0xFF800000> : vector<8xf32>
    %28 = vector.multi_reduction <maximumf>, %27, %cst_18 [1] : vector<8x128xf32> to vector<8xf32>
    %29 = vector.shape_cast %28 : vector<8xf32> to vector<8x1xf32>
    %30 = vector.broadcast %29 : vector<8x1xf32> to vector<8x128xf32>
    %31 = arith.subf %27, %30 : vector<8x128xf32>
    %32 = math.exp %31 : vector<8x128xf32>
    %cst_19 = arith.constant dense<0.000000e+00> : vector<8xf32>
    %33 = vector.multi_reduction <add>, %32, %cst_19 [1] : vector<8x128xf32> to vector<8xf32>
    %34 = vector.shape_cast %33 : vector<8xf32> to vector<8x1xf32>
    %35 = vector.broadcast %34 : vector<8x1xf32> to vector<8x128xf32>
    %36 = arith.divf %32, %35 : vector<8x128xf32>
    %37 = arith.select %25, %36, %22 : vector<8x128xi1>, vector<8x128xf32>
    %c0_20 = arith.constant 0 : index
    %c0_21 = arith.constant 0 : index
    %38 = vector.load %arg8[%c0_20, %c0_21] : memref<8x128xf32, #tpu.memory_space<vmem>>, vector<8x128xf32>
    tpu.vector_store %arg8[%c0_20, %c0_21], %37 {strides = array<i32>} : memref<8x128xf32, #tpu.memory_space<vmem>>, vector<8x128xf32>,
    return
  }
  func.func @transform_0(%arg0: i32) -> (i32, i32) {
    %c0_i32 = arith.constant 0 : i32
    %c0_i32_0 = arith.constant 0 : i32
    return %arg0, %c0_i32 : i32, i32
  }
  func.func @transform_1(%arg0: i32) -> (i32, i32) {
    %c0_i32 = arith.constant 0 : i32
    %c0_i32_0 = arith.constant 0 : i32
    %c0_i32_1 = arith.constant 0 : i32
    return %c0_i32, %c0_i32_0 : i32, i32
  }
  func.func @transform_2(%arg0: i32) -> (i32, i32) {
    %c0_i32 = arith.constant 0 : i32
    %c0_i32_0 = arith.constant 0 : i32
    %c0_i32_1 = arith.constant 0 : i32
    return %c0_i32, %c0_i32_0 : i32, i32
  }
  func.func @transform_3(%arg0: i32) -> (i32, i32) {
    %c0_i32 = arith.constant 0 : i32
    %c0_i32_0 = arith.constant 0 : i32
    %c0_i32_1 = arith.constant 0 : i32
    return %c0_i32, %c0_i32_0 : i32, i32
  }
  func.func @transform_4(%arg0: i32) -> (i32, i32) {
    %c0_i32 = arith.constant 0 : i32
    %c0_i32_0 = arith.constant 0 : i32
    %c0_i32_1 = arith.constant 0 : i32
    return %c0_i32, %c0_i32_0 : i32, i32
  }
  func.func @transform_5(%arg0: i32) -> (i32, i32) {
    %c0_i32 = arith.constant 0 : i32
    %c0_i32_0 = arith.constant 0 : i32
    %c0_i32_1 = arith.constant 0 : i32
    return %c0_i32, %c0_i32_0 : i32, i32
  }
  func.func @transform_6(%arg0: i32) -> (i32, i32) {
    %c0_i32 = arith.constant 0 : i32
    %c0_i32_0 = arith.constant 0 : i32
    %c0_i32_1 = arith.constant 0 : i32
    return %c0_i32, %c0_i32_0 : i32, i32
  }
  func.func @transform_7(%arg0: i32) -> (i32, i32) {
    %c0_i32 = arith.constant 0 : i32
    %c0_i32_0 = arith.constant 0 : i32
    return %arg0, %c0_i32 : i32, i32
  }
}

</mosaic_0001>

<bundles_post_ra>
// kernel: tpu_custom_call.1
= control target key start
LH: loop header
LB: loop body
LE: loop exit
PB: predicated region body
PF: predicated region fallthrough
CT: control target
= control target key end

     0   :  { %12 = vsyncpa [#allocation3], 0  ;;  %s784_s0 = inlined_call_operand.hbm [shape: f32[8,16], index: 0, kind: input, shape index: {}]   ;;  %s785_s1 = inlined_call_operand.hbm [shape: bf16[16,128], index: 1, kind: input, shape index: {}]   ;;  %s786_s2 = inlined_call_operand.vmem [shape: f32[1,128], index: 2, kind: input, shape index: {}]   ;;  %s787_s3 = inlined_call_operand.hbm [shape: bf16[128,128], index: 3, kind: input, shape index: {}]   ;;  %s788_s4 = inlined_call_operand.vmem [shape: f32[1,128], index: 4, kind: input, shape index: {}]   ;;  %s789_s5 = inlined_call_operand.hbm [shape: bf16[128,128], index: 5, kind: input, shape index: {}]   ;;  %s790_s6 = inlined_call_operand.vmem [shape: f32[1,128], index: 6, kind: input, shape index: {}]   ;;  %s791_s7 = inlined_call_operand.hbm [shape: f32[8,128], index: 7, kind: output, shape index: {}]  }
   0x1   :  { %13 = vsyncpa [#allocation6], 0 }
   0x2   :  { %14 = vsyncpa [#allocation9], 0 }
   0x3   :  { %15 = vsyncpa [#allocation4], 0  ;;  %s635_s24 = smov [#allocation5]   ;;  %s517_s28 = scalar_lea.hbm %s785_s1, 128 }
   0x4   :  { %s31_s25 = sshll.u32 %s635_s24, 4  ;;  %p518_p0 = scmp.ne.s32.totalorder %s785_s1, %s517_s28  ;;  %s32_s25 = int_to_ptr.vmem [resolvable:$true] %s31_s25 }
   0x5   :  { %p521_p1 = scmp.lt.u32.totalorder %s517_s28, %s785_s1 }
   0x7   :  { %p523_p2 = pnand %p521_p1, %p518_p0 }
   0x9   :  { %526 = shalt.err (!%p523_p2)
}
   0xa   :  { %s527_s10 = scalar_lea.vmem %s32_s25, 128  ;;  %p532_p4 = scmp.lt.s32.totalorder %s32_s25, %s32_s25 }
   0xb   :  { %p528_p3 = scmp.ne.s32.totalorder %s32_s25, %s527_s10  ;;  %p533_p5 = scmp.lt.s32.totalorder %s527_s10, %s527_s10 }
   0xd   :  { %p534_p6 = por %p533_p5, %p532_p4 }
   0xf   :  { %p535_p7 = pnand %p534_p6, %p528_p3 }
  0x11   :  { %538 = shalt.err (!%p535_p7)
}
  0x12   :  { %s636_s11 = smov 64   ;;  %s637_s12 = smov 4  }
  0x13   :  { %37 = dma.hbm_to_vmem [thread:$0]  %s785_s1, 128, %s32_s25, [#allocation6], %s636_s11, %s636_s11, %s637_s12  }
  0x14   :  { %s638_s15 = smov [#allocation2]   ;;  %s639_s17 = smov [#allocation7]  }
  0x15   :  { %s22_s16 = sshll.u32 %s638_s15, 4  ;;  %s45_s18 = sshll.u32 %s639_s17, 4  ;;  %s23_s16 = int_to_ptr.vmem [resolvable:$true] %s22_s16  ;;  %s46_s18 = int_to_ptr.vmem [resolvable:$true] %s45_s18 }
  0x16   :  { %s539_s21 = scalar_lea.hbm %s784_s0, 128 }
  0x17   :  { %p540_p8 = scmp.ne.s32.totalorder %s784_s0, %s539_s21  ;;  %p543_p9 = scmp.lt.u32.totalorder %s539_s21, %s784_s0 }
  0x19   :  { %p545_p10 = pnand %p543_p9, %p540_p8 }
  0x1b   :  { %548 = shalt.err (!%p545_p10)
}
  0x1c   :  { %s549_s1 = scalar_lea.vmem %s23_s16, 128  ;;  %p554_p12 = scmp.lt.s32.totalorder %s23_s16, %s23_s16 }
  0x1d   :  { %p550_p11 = scmp.ne.s32.totalorder %s23_s16, %s549_s1  ;;  %p555_p13 = scmp.lt.s32.totalorder %s549_s1, %s549_s1 }
  0x1f   :  { %p556_p0 = por %p555_p13, %p554_p12 }
  0x21   :  { %p557_p1 = pnand %p556_p0, %p550_p11 }
  0x23   :  { %560 = shalt.err (!%p557_p1)
}
  0x24   :  { %25 = dma.hbm_to_vmem [thread:$0]  %s784_s0, 128, %s23_s16, [#allocation3]  }
  0x25   :  { %s561_s30 = scalar_lea.hbm %s787_s3, 1024 }
  0x26   :  { %p562_p2 = scmp.ne.s32.totalorder %s787_s3, %s561_s30  ;;  %p565_p3 = scmp.lt.u32.totalorder %s561_s30, %s787_s3 }
  0x28   :  { %p567_p4 = pnand %p565_p3, %p562_p2 }
  0x2a   :  { %570 = shalt.err (!%p567_p4)
}
  0x2b   :  { %s571_s14 = scalar_lea.vmem %s46_s18, 1024  ;;  %p576_p6 = scmp.lt.s32.totalorder %s46_s18, %s46_s18 }
  0x2c   :  { %p572_p5 = scmp.ne.s32.totalorder %s46_s18, %s571_s14  ;;  %p577_p7 = scmp.lt.s32.totalorder %s571_s14, %s571_s14 }
  0x2e   :  { %p578_p8 = por %p577_p7, %p576_p6 }
  0x30   :  { %p579_p9 = pnand %p578_p8, %p572_p5 }
  0x32   :  { %582 = shalt.err (!%p579_p9)
}
  0x33   :  { %51 = dma.hbm_to_vmem [thread:$0]  %s787_s3, 1024, %s46_s18, [#allocation6], %s636_s11, %s636_s11, %s637_s12  }
  0x34   :  { %s640_s16 = smov [#allocation8]   ;;  %s583_s21 = scalar_lea.hbm %s789_s5, 1024 }
  0x35   :  { %s59_s17 = sshll.u32 %s640_s16, 4  ;;  %p584_p10 = scmp.ne.s32.totalorder %s789_s5, %s583_s21  ;;  %s60_s17 = int_to_ptr.vmem [resolvable:$true] %s59_s17 }
  0x36   :  { %p587_p11 = scmp.lt.u32.totalorder %s583_s21, %s789_s5 }
  0x38   :  { %p589_p12 = pnand %p587_p11, %p584_p10 }
  0x3a   :  { %592 = shalt.err (!%p589_p12)
}
  0x3b   :  { %s593_s1 = scalar_lea.vmem %s60_s17, 1024  ;;  %p598_p0 = scmp.lt.s32.totalorder %s60_s17, %s60_s17 }
  0x3c   :  { %p594_p13 = scmp.ne.s32.totalorder %s60_s17, %s593_s1  ;;  %p599_p1 = scmp.lt.s32.totalorder %s593_s1, %s593_s1 }
  0x3e   :  { %p600_p2 = por %p599_p1, %p598_p0 }
  0x40   :  { %p601_p3 = pnand %p600_p2, %p594_p13 }
  0x42   :  { %604 = shalt.err (!%p601_p3)
}
  0x43   :  { %65 = dma.hbm_to_vmem [thread:$0]  %s789_s5, 1024, %s60_s17, [#allocation9], %s636_s11, %s636_s11, %s637_s12  }
  0x44   :  { %627 = dma.done.wait [#allocation3], 128  }
  0x45   :  { %628 = vsyncadd [#allocation3], 4294967168 }
  0x46   :  { %629 = dma.done.wait [#allocation6], 1152  }
  0x47   :  { %630 = vsyncadd [#allocation6], 4294966144 }
  0x48   :  { %631 = dma.done.wait [#allocation9], 1024  }
  0x49   :  { %632 = vsyncadd [#allocation9], 4294966272  ;;  %v641_v0 = vmov 0.0   ;;  %vm642_vm0 = vmmov 0   ;;  %v496_v1 = vld [vmem:[#allocation5] sm:$0xff]   ;;  %v81_v2 = vld [vmem:[#allocation2] sm:$0xff]  ;;  %v368_v36 = vlaneseq }
  0x4a   :  { %441 = vmatprep.subr.bf16.mxu0 %v641_v0  ;;  %443 = vmatprep.mubr.msk.bf16.mxu0 %vm642_vm0, %v641_v0  ;;  %v82_v3 = vpack.c.bf16 %v81_v2, %v81_v2  ;;  %vm98_vm1 = vcmask 130048   ;;  %v497_v4 = vld [vmem:[#allocation7] sm:$0xff]   ;;  %v498_v5 = vld [vmem:[#allocation7 + $0x8] sm:$0xff]   ;;  %v499_v6 = vld [vmem:[#allocation7 + $0x10] sm:$0xff]  }
  0x4b   :  { %447 = vmatprep.subr.bf16.mxu1 %v641_v0  ;;  %463 = vmatprep.mubr.msk.bf16.mxu1 %vm642_vm0, %v641_v0  ;;  %v500_v7 = vld [vmem:[#allocation7 + $0x18] sm:$0xff]   ;;  %v501_v8 = vld [vmem:[#allocation7 + $0x20] sm:$0xff]   ;;  %v502_v9 = vld [vmem:[#allocation7 + $0x28] sm:$0xff]   ;;  %v369_v37 = vand.u32 127, %v368_v36 }
  0x4c   :  { %442 = vmatpush3.bf16.msra.mxu0 %v496_v1  ;;  %448 = vmatpush3.bf16.msra.mxu1 %v497_v4  ;;  %v503_v10 = vld [vmem:[#allocation7 + $0x30] sm:$0xff]   ;;  %v504_v11 = vld [vmem:[#allocation7 + $0x38] sm:$0xff]   ;;  %v505_v12 = vld [vmem:[#allocation8] sm:$0xff]  }
  0x4d   :  { %467 = vmatprep.subr.bf16.mxu0 %v641_v0  ;;  %449 = vmatprep.subr.bf16.mxu1 %v641_v0  ;;  %v506_v13 = vld [vmem:[#allocation8 + $0x8] sm:$0xff]   ;;  %v507_v14 = vld [vmem:[#allocation8 + $0x10] sm:$0xff]   ;;  %v508_v15 = vld [vmem:[#allocation8 + $0x18] sm:$0xff]   ;;  %vm370_vm2 = vcmp.lt.s32.totalorder %v369_v37, 4 }
  0x4e   :  { %v509_v16 = vld [vmem:[#allocation8 + $0x20] sm:$0xff]   ;;  %v510_v17 = vld [vmem:[#allocation8 + $0x28] sm:$0xff]   ;;  %v400_v18 = vld [vmem:[%s786_s2] ss:$0 sm:$0xff] }
  0x4f   :  { %444 = vmatmul.mubr.msk.bf16.vlgmr.msra.gmra.mrb[0].mxu0 %vm98_vm1, %v82_v3  ;;  %v511_v26 = vld [vmem:[#allocation8 + $0x30] sm:$0xff]   ;;  %v512_v27 = vld [vmem:[#allocation8 + $0x38] sm:$0xff]  }
  0x50   :  { %483 = vmatprep.mubr.msk.bf16.mxu0 %vm642_vm0, %v641_v0  ;;  %450 = vmatpush3.bf16.msra.mxu1 %v498_v5  ;;  %v403_v28 = vld [vmem:[%s788_s4] ss:$0 sm:$0xff]  ;;  %s643_s4 = smov [#allocation10]  }
  0x51   :  { %451 = vmatprep.subr.bf16.mxu1 %v641_v0  ;;  %468 = vmatpush3.bf16.msra.mxu0 %v505_v12  ;;  %v412_v38 = vld [vmem:[%s790_s6] ss:$0 sm:$0xff]  ;;  %s389_s28 = sshll.u32 %s643_s4, 4  ;;  %s390_s28 = int_to_ptr.vmem [resolvable:$true] %s389_s28 }
  0x52   :  { %469 = vmatprep.subr.bf16.mxu0 %v641_v0  ;;  %s605_s6 = scalar_lea.vmem %s390_s28, 128  ;;  %p610_p5 = scmp.lt.s32.totalorder %s390_s28, %s390_s28 }
  0x53   :  { %p606_p4 = scmp.ne.s32.totalorder %s390_s28, %s605_s6  ;;  %p611_p6 = scmp.lt.s32.totalorder %s605_s6, %s605_s6 }
  0x54   :  { %452 = vmatpush3.bf16.msra.mxu1 %v499_v6 }
  0x55   :  { %453 = vmatprep.subr.bf16.mxu1 %v641_v0  ;;  %470 = vmatpush3.bf16.msra.mxu0 %v506_v13  ;;  %p612_p7 = por %p611_p6, %p610_p5 }
  0x56   :  { %471 = vmatprep.subr.bf16.mxu0 %v641_v0 }
  0x57   :  { %p613_p8 = pnand %p612_p7, %p606_p4 }
  0x58   :  { %454 = vmatpush3.bf16.msra.mxu1 %v500_v7 }
  0x59   :  { %455 = vmatprep.subr.bf16.mxu1 %v641_v0  ;;  %472 = vmatpush3.bf16.msra.mxu0 %v507_v14 }
  0x5a   :  { %473 = vmatprep.subr.bf16.mxu0 %v641_v0 }
  0x5c   :  { %456 = vmatpush3.bf16.msra.mxu1 %v501_v8 }
  0x5d   :  { %457 = vmatprep.subr.bf16.mxu1 %v641_v0  ;;  %474 = vmatpush3.bf16.msra.mxu0 %v508_v15 }
  0x5e   :  { %475 = vmatprep.subr.bf16.mxu0 %v641_v0 }
  0x60   :  { %458 = vmatpush3.bf16.msra.mxu1 %v502_v9 }
  0x61   :  { %459 = vmatprep.subr.bf16.mxu1 %v641_v0  ;;  %476 = vmatpush3.bf16.msra.mxu0 %v509_v16 }
  0x62   :  { %477 = vmatprep.subr.bf16.mxu0 %v641_v0 }
  0x64   :  { %460 = vmatpush3.bf16.msra.mxu1 %v503_v10 }
  0x65   :  { %461 = vmatprep.subr.bf16.mxu1 %v641_v0  ;;  %478 = vmatpush3.bf16.msra.mxu0 %v510_v17 }
  0x66   :  { %479 = vmatprep.subr.bf16.mxu0 %v641_v0 }
  0x68   :  { %462 = vmatpush3.bf16.msra.mxu1 %v504_v11 }
  0x69   :  { %480 = vmatpush3.bf16.msra.mxu0 %v511_v26 }
  0x6a   :  { %481 = vmatprep.subr.bf16.mxu0 %v641_v0 }
  0x6d   :  { %482 = vmatpush3.bf16.msra.mxu0 %v512_v27 }
 0x122   :  { %v136_v19 = vpop.f32.mrb[0].mxu0 }
 0x123   :  { %v137_v20 = vadd.f32 %v400_v18, %v136_v19  ;;  %v445_v21 = vpop.f32.mrb[1].mxu0 }
 0x124   :  { %v139_v22 = vpop.f32.mrb[2].mxu0 }
 0x125   :  { %v142_v23 = vmax.f32 %v137_v20, 0.0  ;;  %v446_v24 = vpop.f32.mrb[3].mxu0 }
 0x127   :  { %v143_v25 = vpack.c.bf16 %v142_v23, %v142_v23 }
 0x129   :  { %464 = vmatmul.mubr.bf16.vlgmr.msra.gmra.mrb[0].mxu1 %v143_v25 }
 0x1fc   :  { %v249_v29 = vpop.f32.mrb[0].mxu1 }
 0x1fd   :  { %v250_v30 = vadd.f32 %v403_v28, %v249_v29  ;;  %v465_v31 = vpop.f32.mrb[1].mxu1 }
 0x1fe   :  { %v252_v32 = vpop.f32.mrb[2].mxu1 }
 0x1ff   :  { %v255_v33 = vmax.f32 %v250_v30, 0.0  ;;  %v466_v34 = vpop.f32.mrb[3].mxu1 }
 0x201   :  { %v256_v35 = vpack.c.bf16 %v255_v33, %v255_v33 }
 0x203   :  { %484 = vmatmul.mubr.bf16.vlgmr.msra.gmra.mrb[4].mxu0 %v256_v35 }
 0x2d6   :  { %v362_v39 = vpop.f32.mrb[4].mxu0 }
 0x2d7   :  { %v363_v40 = vadd.f32 %v412_v38, %v362_v39  ;;  %v485_v41 = vpop.f32.mrb[5].mxu0 }
 0x2d8   :  { %v365_v42 = vpop.f32.mrb[6].mxu0 }
 0x2d9   :  { %v486_v43 = vpop.f32.mrb[7].mxu0  ;;  %v371_v44 = vsel %vm370_vm2, %v363_v40, -inf }
 0x2da   :  { %372 = vmax.xlane.f32.xlu0 %v371_v44 }
 0x367   :  { %v373_v45 = vpop.xlane.xlu0 %372 }
 0x368   :  { %v374_v46 = vsub.f32 %v371_v44, %v373_v45 }
 0x36a   :  { %v375_v47 = vmul.f32 1.442695, %v374_v46 }
 0x36c   :  { %513 = vpow2.f32 %v375_v47 }
 0x376   :  { %v514_v48 = vpop.eup %513 }
 0x377   :  { %377 = vadd.xlane.f32.xlu0 %v514_v48 }
 0x404   :  { %v378_v49 = vpop.xlane.xlu0 %377 }
 0x405   :  { %515 = vrcp.f32 %v378_v49 }
 0x40f   :  { %v516_v50 = vpop.eup %515 }
 0x410   :  { %v380_v51 = vmul.f32 %v516_v50, %v514_v48 }
 0x412   :  { %v381_v52 = vsel %vm370_vm2, %v380_v51, %v363_v40 }
 0x413   :  { %382 = vst [vmem:[#allocation10] sm:$0xff] %v381_v52 }
 0x414   :  { %616 = shalt.err (!%p613_p8)
}
 0x415   :  { %s617_s8 = scalar_lea.hbm %s791_s7, 128 }
 0x416   :  { %p618_p9 = scmp.ne.s32.totalorder %s791_s7, %s617_s8  ;;  %p621_p10 = scmp.lt.u32.totalorder %s617_s8, %s791_s7 }
 0x418   :  { %p623_p11 = pnand %p621_p10, %p618_p9 }
 0x41a   :  { %626 = shalt.err (!%p623_p11)
}
 0x41b   :  { %392 = dma.vmem_to_hbm [thread:$0]  %s390_s28, 128, %s791_s7, [#allocation4]  }
 0x41c   :  { %633 = dma.done.wait [#allocation4], 128  }
 0x41d   :  { %634 = vsyncadd [#allocation4], 4294967168 }
 0x41e   :  { %396 = vsyncpa [#allocation3], 1 }
 0x41f   :  { %397 = vsyncpa [#allocation6], 1 }
 0x420   :  { %398 = vsyncpa [#allocation9], 1 }
 0x421   :  { %399 = vsyncpa [#allocation4], 1 }

</bundles_post_ra>
